<compile_context>
chip_gen: v7x
topology: tpu7x:2x2x1
jax: 0.10.0
libtpu: 0.0.40
codegen_flags: <defaults>
</compile_context>

<pallas_src>
import jax
import jax.numpy as jnp
import numpy as np
from jax.experimental import pallas as pl
from jax.experimental.pallas import tpu as pltpu


def _round_up(v, m):
    return (v + m - 1) // m * m


def _sampler_kernel(x_ref, eps_ref, wcat_ref, bcat_ref, out_ref):
    f = x_ref.shape[-1]

    # Fused GEMM on the MXU: y = x @ [W_mu | W_var] + [b_mu | b_var] -> (tile_n, 2F)
    y = jnp.dot(x_ref[...], wcat_ref[...],
                preferred_element_type=jnp.float32) + bcat_ref[...]
    mu = y[:, :f]
    logvar = y[:, f:]

    # Single EUP exp; exp(logvar) is recovered as std*std (one VPU mul).
    std = jnp.exp(0.5 * logvar)
    var = std * std

    sample = eps_ref[...] * std + mu
    kld = 1.0 + logvar - mu * mu - var

    # Direct slice stores into the lane-dense (tile_n, 2F) output -- no
    # concatenate, no extra VMEM temp.  (For F a multiple of 128 these are
    # unmasked full-lane stores.)
    out_ref[:, :f] = sample.astype(out_ref.dtype)
    out_ref[:, f:] = kld.astype(out_ref.dtype)


def part_feat_sampler(x, w_mu, b_mu, w_var, b_var, key, *, block_n=1024):
    """PartFeatSampler forward (probabilistic branch).

    x: (N, F); w_*: (F, F) stored as (in, out); b_*: (1, F) or (F,);
    key: jax PRNG key used to draw eps ~ N(0, 1) (torch.randn_like equivalent).

    Returns (N, 2F): [:, :F] = eps*std + mu,
                     [:, F:] = 1 + logvar - mu^2 - exp(logvar).
    """
    N, F = x.shape

    # Fuse the two Linear layers into one (F, 2F) weight / (1, 2F) bias.
    # (For large F, cast these to bf16 here for ~4x MXU throughput on v6e/v7x.)
    w_cat = jnp.concatenate([w_mu, w_var], axis=1)
    b_cat = jnp.concatenate([b_mu.reshape(1, F), b_var.reshape(1, F)], axis=1)

    # eps drawn in the wrapper (portable; keeps the in-kernel epilogue tiny).
    eps = jax.random.normal(key, (N, F), dtype=x.dtype)

    # Row tile: sublane-aligned, capped by block_n.  No input padding -- the
    # partial last tile (if any) writes its garbage rows out of bounds where
    # they are discarded, and nothing reduces across rows.
    tile_n = min(block_n, _round_up(N, 8))
    grid_n = pl.cdiv(N, tile_n)

    out = pl.pallas_call(
        _sampler_kernel,
        out_shape=jax.ShapeDtypeStruct((N, 2 * F), x.dtype),
        grid=(grid_n,),
        in_specs=[
            pl.BlockSpec((tile_n, F), lambda i: (i, 0)),      # x rows
            pl.BlockSpec((tile_n, F), lambda i: (i, 0)),      # eps rows
            pl.BlockSpec((F, 2 * F), lambda i: (0, 0)),       # fused weight (resident)
            pl.BlockSpec((1, 2 * F), lambda i: (0, 0)),       # fused bias   (resident)
        ],
        out_specs=pl.BlockSpec((tile_n, 2 * F), lambda i: (i, 0)),
        compiler_params=pltpu.CompilerParams(
            dimension_semantics=("parallel",),                # shard rows across TCs
        ),
    )(x, eps, w_cat, b_cat)

    return out


if __name__ == "__main__":
    # Small shapes consistent with the module: a batch of part features with
    # feature_size = 64 (so the (N, 2F) output is a full 128-lane row).
    N, F = 16, 64

    key = jax.random.PRNGKey(0)
    kx, kwm, kbm, kwv, kbv, keps = jax.random.split(key, 6)

    x = jax.random.normal(kx, (N, F), dtype=jnp.float32)

    # Deterministic "parameters" for the two Linear(F, F) layers, stored as
    # (F_in, F_out) (the transpose of torch's (out, in) weight layout).
    bound = 1.0 / np.sqrt(F)
    w_mu = jax.random.uniform(kwm, (F, F), jnp.float32, -bound, bound)
    b_mu = jax.random.uniform(kbm, (1, F), jnp.float32, -bound, bound)
    w_var = jax.random.uniform(kwv, (F, F), jnp.float32, -bound, bound)
    b_var = jax.random.uniform(kbv, (1, F), jnp.float32, -bound, bound)

    out = part_feat_sampler(x, w_mu, b_mu, w_var, b_var, keps)
    out = jax.block_until_ready(out)
    assert out.shape == (N, 2 * F)

    # ---- correctness checks against a float64 NumPy reference ----
    x64 = np.asarray(x, np.float64)
    mu_ref = x64 @ np.asarray(w_mu, np.float64) + np.asarray(b_mu, np.float64)
    logvar_ref = x64 @ np.asarray(w_var, np.float64) + np.asarray(b_var, np.float64)
    std_ref = np.exp(0.5 * logvar_ref)
    kld_ref = 1.0 + logvar_ref - mu_ref ** 2 - np.exp(logvar_ref)

    # eps is reproducible: same key, same draw as inside the wrapper.
    eps_ref = np.asarray(jax.random.normal(keps, (N, F), dtype=jnp.float32), np.float64)
    sample_ref = eps_ref * std_ref + mu_ref

    np.testing.assert_allclose(np.asarray(out[:, F:]), kld_ref, rtol=1e-4, atol=1e-4)
    np.testing.assert_allclose(np.asarray(out[:, :F]), sample_ref, rtol=1e-4, atol=1e-4)
    assert np.all(np.isfinite(np.asarray(out)))

    # TODO(synk): non-probabilistic branch (return mu only) is a plain Linear;
    # not exercised here since the module defaults to probabilistic=True.

    print("KERNEL_OK")
</pallas_src>

<mosaic_0001>
module attributes {stable_mosaic.version = 11 : i64} {
  func.func @_sampler_kernel(%arg0: i32, %arg1: memref<16x64xf32, #tpu.memory_space<vmem>>, %arg2: memref<16x64xf32, #tpu.memory_space<vmem>>, %arg3: memref<64x128xf32, #tpu.memory_space<vmem>>, %arg4: memref<1x128xf32, #tpu.memory_space<vmem>>, %arg5: memref<16x128xf32, #tpu.memory_space<vmem>>) attributes {dimension_semantics = [#tpu.dimension_semantics<parallel>], iteration_bounds = array<i64: 1>, scalar_prefetch = 0 : i64, scratch_operands = 0 : i64, tpu.core_type = #tpu.core_type<tc>, window_params = [{transform_indices = @transform_0, window_bounds = array<i64: 16, 64>}, {transform_indices = @transform_1, window_bounds = array<i64: 16, 64>}, {pipeline_mode = #tpu.pipeline_mode<synchronous>, transform_indices = @transform_2, window_bounds = array<i64: 64, 128>}, {pipeline_mode = #tpu.pipeline_mode<synchronous>, transform_indices = @transform_3, window_bounds = array<i64: 1, 128>}, {transform_indices = @transform_4, window_bounds = array<i64: 16, 128>}]} {
    %c0 = arith.constant 0 : index
    %c0_0 = arith.constant 0 : index
    %0 = vector.load %arg1[%c0, %c0_0] : memref<16x64xf32, #tpu.memory_space<vmem>>, vector<16x64xf32>
    %c0_1 = arith.constant 0 : index
    %c0_2 = arith.constant 0 : index
    %1 = vector.load %arg3[%c0_1, %c0_2] : memref<64x128xf32, #tpu.memory_space<vmem>>, vector<64x128xf32>
    %cst = arith.constant dense<0.000000e+00> : vector<16x128xf32>
    %2 = tpu.matmul %0, %1, %cst {dimension_numbers = #tpu.dot_dimension_numbers<[1], [0], [0], [1], [0, 0, 1, 1], [], []>} : vector<16x64xf32>, vector<64x128xf32>, vector<16x128xf32> -> vector<16x128xf32>
    %c0_3 = arith.constant 0 : index
    %c0_4 = arith.constant 0 : index
    %3 = vector.load %arg4[%c0_3, %c0_4] : memref<1x128xf32, #tpu.memory_space<vmem>>, vector<1x128xf32>
    %4 = vector.broadcast %3 : vector<1x128xf32> to vector<16x128xf32>
    %5 = arith.addf %2, %4 : vector<16x128xf32>
    %6 = vector.extract_strided_slice %5 {offsets = [0, 0], sizes = [16, 64], strides = [1, 1]} : vector<16x128xf32> to vector<16x64xf32>
    %7 = vector.extract_strided_slice %5 {offsets = [0, 64], sizes = [16, 64], strides = [1, 1]} : vector<16x128xf32> to vector<16x64xf32>
    %cst_5 = arith.constant 5.000000e-01 : f32
    %8 = vector.broadcast %cst_5 : f32 to vector<16x64xf32>
    %9 = arith.mulf %8, %7 : vector<16x64xf32>
    %10 = math.exp %9 : vector<16x64xf32>
    %11 = arith.mulf %10, %10 : vector<16x64xf32>
    %c0_6 = arith.constant 0 : index
    %c0_7 = arith.constant 0 : index
    %12 = vector.load %arg2[%c0_6, %c0_7] : memref<16x64xf32, #tpu.memory_space<vmem>>, vector<16x64xf32>
    %13 = arith.mulf %12, %10 : vector<16x64xf32>
    %14 = arith.addf %13, %6 : vector<16x64xf32>
    %cst_8 = arith.constant 1.000000e+00 : f32
    %15 = vector.broadcast %cst_8 : f32 to vector<16x64xf32>
    %16 = arith.addf %15, %7 : vector<16x64xf32>
    %17 = arith.mulf %6, %6 : vector<16x64xf32>
    %18 = arith.subf %16, %17 : vector<16x64xf32>
    %19 = arith.subf %18, %11 : vector<16x64xf32>
    %c0_9 = arith.constant 0 : index
    %c0_10 = arith.constant 0 : index
    %20 = vector.load %arg5[%c0_9, %c0_10] : memref<16x128xf32, #tpu.memory_space<vmem>>, vector<16x64xf32>
    tpu.vector_store %arg5[%c0_9, %c0_10], %14 {strides = array<i32>} : memref<16x128xf32, #tpu.memory_space<vmem>>, vector<16x64xf32>,
    %c0_11 = arith.constant 0 : index
    %c64 = arith.constant 64 : index
    %21 = vector.load %arg5[%c0_11, %c64] : memref<16x128xf32, #tpu.memory_space<vmem>>, vector<16x64xf32>
    tpu.vector_store %arg5[%c0_11, %c64], %19 {strides = array<i32>} : memref<16x128xf32, #tpu.memory_space<vmem>>, vector<16x64xf32>,
    return
  }
  func.func @transform_0(%arg0: i32) -> (i32, i32) {
    %c0_i32 = arith.constant 0 : i32
    %c0_i32_0 = arith.constant 0 : i32
    return %arg0, %c0_i32 : i32, i32
  }
  func.func @transform_1(%arg0: i32) -> (i32, i32) {
    %c0_i32 = arith.constant 0 : i32
    %c0_i32_0 = arith.constant 0 : i32
    return %arg0, %c0_i32 : i32, i32
  }
  func.func @transform_2(%arg0: i32) -> (i32, i32) {
    %c0_i32 = arith.constant 0 : i32
    %c0_i32_0 = arith.constant 0 : i32
    %c0_i32_1 = arith.constant 0 : i32
    return %c0_i32, %c0_i32_0 : i32, i32
  }
  func.func @transform_3(%arg0: i32) -> (i32, i32) {
    %c0_i32 = arith.constant 0 : i32
    %c0_i32_0 = arith.constant 0 : i32
    %c0_i32_1 = arith.constant 0 : i32
    return %c0_i32, %c0_i32_0 : i32, i32
  }
  func.func @transform_4(%arg0: i32) -> (i32, i32) {
    %c0_i32 = arith.constant 0 : i32
    %c0_i32_0 = arith.constant 0 : i32
    return %arg0, %c0_i32 : i32, i32
  }
}

</mosaic_0001>

<bundles_post_ra>
// kernel: tpu_custom_call.1
= control target key start
LH: loop header
LB: loop body
LE: loop exit
PB: predicated region body
PF: predicated region fallthrough
CT: control target
= control target key end

     0   :  { %9 = vsyncpa [#allocation3], 0  ;;  %s478_s0 = inlined_call_operand.hbm [shape: f32[16,64], index: 0, kind: input, shape index: {}]   ;;  %s479_s1 = inlined_call_operand.hbm [shape: f32[16,64], index: 1, kind: input, shape index: {}]   ;;  %s480_s2 = inlined_call_operand.hbm [shape: f32[64,128], index: 2, kind: input, shape index: {}]   ;;  %s481_s3 = inlined_call_operand.vmem [shape: f32[1,128], index: 3, kind: input, shape index: {}]   ;;  %s482_s4 = inlined_call_operand.hbm [shape: f32[16,128], index: 4, kind: output, shape index: {}]  }
   0x1   :  { %10 = vsyncpa [#allocation6], 0 }
   0x2   :  { %11 = vsyncpa [#allocation4], 0  ;;  %s372_s15 = smov [#allocation5]   ;;  %s373_s17 = smov [#allocation2]  }
   0x3   :  { %s29_s16 = sshll.u32 %s372_s15, 4  ;;  %s17_s18 = sshll.u32 %s373_s17, 4  ;;  %s30_s16 = int_to_ptr.vmem [resolvable:$true] %s29_s16  ;;  %s404_s18 = int_to_ptr.vmem [resolvable:$true] %s17_s18 }
   0x4   :  { %s278_s21 = scalar_lea.hbm %s479_s1, 256 }
   0x5   :  { %p279_p0 = scmp.ne.s32.totalorder %s479_s1, %s278_s21  ;;  %p282_p1 = scmp.lt.u32.totalorder %s278_s21, %s479_s1 }
   0x7   :  { %p284_p2 = pnand %p282_p1, %p279_p0 }
   0x9   :  { %287 = shalt.err (!%p284_p2)
}
   0xa   :  { %s288_s26 = scalar_lea.vmem %s30_s16, 256  ;;  %p293_p4 = scmp.lt.s32.totalorder %s30_s16, %s30_s16 }
   0xb   :  { %p289_p3 = scmp.ne.s32.totalorder %s30_s16, %s288_s26  ;;  %p294_p5 = scmp.lt.s32.totalorder %s288_s26, %s288_s26 }
   0xd   :  { %p295_p6 = por %p294_p5, %p293_p4 }
   0xf   :  { %p296_p7 = pnand %p295_p6, %p289_p3 }
  0x11   :  { %299 = shalt.err (!%p296_p7)
}
  0x12   :  { %s374_s27 = smov 128   ;;  %s375_s28 = smov 8  }
  0x13   :  { %35 = dma.hbm_to_vmem [thread:$0]  %s479_s1, 256, %s30_s16, [#allocation6], %s374_s27, %s374_s27, %s375_s28  }
  0x14   :  { %s300_s7 = scalar_lea.hbm %s478_s0, 256 }
  0x15   :  { %p301_p8 = scmp.ne.s32.totalorder %s478_s0, %s300_s7  ;;  %p304_p9 = scmp.lt.u32.totalorder %s300_s7, %s478_s0 }
  0x17   :  { %p306_p10 = pnand %p304_p9, %p301_p8 }
  0x19   :  { %309 = shalt.err (!%p306_p10)
}
  0x1a   :  { %s310_s12 = scalar_lea.vmem %s404_s18, 256  ;;  %p315_p12 = scmp.lt.s32.totalorder %s404_s18, %s404_s18 }
  0x1b   :  { %p311_p11 = scmp.ne.s32.totalorder %s404_s18, %s310_s12  ;;  %p316_p13 = scmp.lt.s32.totalorder %s310_s12, %s310_s12 }
  0x1d   :  { %p317_p0 = por %p316_p13, %p315_p12 }
  0x1f   :  { %p318_p1 = pnand %p317_p0, %p311_p11 }
  0x21   :  { %321 = shalt.err (!%p318_p1)
}
  0x22   :  { %23 = dma.hbm_to_vmem [thread:$0]  %s478_s0, 256, %s404_s18, [#allocation3], %s374_s27, %s374_s27, %s375_s28  }
  0x23   :  { %s376_s14 = smov [#allocation7]   ;;  %s322_s19 = scalar_lea.hbm %s480_s2, 1024 }
  0x24   :  { %s41_s15 = sshll.u32 %s376_s14, 4  ;;  %p323_p2 = scmp.ne.s32.totalorder %s480_s2, %s322_s19  ;;  %s42_s15 = int_to_ptr.vmem [resolvable:$true] %s41_s15 }
  0x25   :  { %p326_p3 = scmp.lt.u32.totalorder %s322_s19, %s480_s2 }
  0x27   :  { %p328_p4 = pnand %p326_p3, %p323_p2 }
  0x29   :  { %331 = shalt.err (!%p328_p4)
}
  0x2a   :  { %s332_s24 = scalar_lea.vmem %s42_s15, 1024  ;;  %p337_p6 = scmp.lt.s32.totalorder %s42_s15, %s42_s15 }
  0x2b   :  { %p333_p5 = scmp.ne.s32.totalorder %s42_s15, %s332_s24  ;;  %p338_p7 = scmp.lt.s32.totalorder %s332_s24, %s332_s24 }
  0x2d   :  { %p339_p8 = por %p338_p7, %p337_p6 }
  0x2f   :  { %p340_p9 = pnand %p339_p8, %p333_p5 }
  0x31   :  { %343 = shalt.err (!%p340_p9)
}
  0x32   :  { %47 = dma.hbm_to_vmem [thread:$0]  %s480_s2, 1024, %s42_s15, [#allocation6], %s374_s27, %s374_s27, %s375_s28  }
  0x33   :  { %366 = dma.done.wait [#allocation3], 256  }
  0x34   :  { %367 = vsyncadd [#allocation3], 4294967040 }
  0x35   :  { %368 = dma.done.wait [#allocation6], 1280  }
  0x36   :  { %369 = vsyncadd [#allocation6], 4294966016  ;;  %v61_v0 = vld [vmem:[#allocation7] sm:$0xff]  ;;  %v62_v1 = vld [vmem:[#allocation7 + $0x8] sm:$0xff]  ;;  %vm76_vm0 = vcmask 523264   ;;  %s377_s26 = smov 64  }
  0x37   :  { %v63_v2 = vld [vmem:[#allocation7 + $0x10] sm:$0xff]  ;;  %v251_v3 = vpack.c.bf16 %v62_v1, %v61_v0  ;;  %v64_v4 = vld [vmem:[#allocation7 + $0x18] sm:$0xff]  ;;  %v65_v6 = vld [vmem:[#allocation7 + $0x20] sm:$0xff]  ;;  %vm198_vm1 = vcmask 1048064  }
  0x38   :  { %v255_v5 = vpack.c.bf16 %v64_v4, %v63_v2  ;;  %v66_v7 = vld [vmem:[#allocation7 + $0x28] sm:$0xff]  ;;  %v59_v8 = vld [vmem:[#allocation2] sm:$0xff]  ;;  %v67_v10 = vld [vmem:[#allocation7 + $0x30] sm:$0xff] }
  0x39   :  { %252 = vmatprep.subr.bf16.mxu0 %v251_v3  ;;  %248 = vmatprep.mubr.msk.f32.mxu0 %vm76_vm0, %v59_v8  ;;  %v259_v9 = vpack.c.bf16 %v66_v7, %v65_v6  ;;  %v68_v11 = vld [vmem:[#allocation7 + $0x38] sm:$0xff]  ;;  %v60_v13 = vld [vmem:[#allocation2 + $0x8] sm:$0xff]  ;;  %v219_v14 = vld [vmem:[%s481_s3] ss:$0 sm:$0xff]  ;;  %s378_s3 = smov [#allocation8]  }
  0x3a   :  { %254 = vmatpush3.bf16.msra.mxu0 %v251_v3  ;;  %v263_v12 = vpack.c.bf16 %v68_v11, %v67_v10  ;;  %v166_v29 = vld [vmem:[#allocation5] sm:$0xff]  ;;  %v167_v36 = vld [vmem:[#allocation5 + $0x8] sm:$0xff]  ;;  %s206_s29 = sshll.u32 %s378_s3, 4  ;;  %s207_s29 = int_to_ptr.vmem [resolvable:$true] %s206_s29 }
  0x3b   :  { %256 = vmatprep.subr.bf16.mxu0 %v255_v5  ;;  %s344_s30 = scalar_lea.vmem %s207_s29, 256  ;;  %p349_p11 = scmp.lt.s32.totalorder %s207_s29, %s207_s29 }
  0x3c   :  { %p345_p10 = scmp.ne.s32.totalorder %s207_s29, %s344_s30  ;;  %p350_p12 = scmp.lt.s32.totalorder %s344_s30, %s344_s30 }
  0x3e   :  { %258 = vmatpush3.bf16.msra.mxu0 %v255_v5  ;;  %p351_p13 = por %p350_p12, %p349_p11 }
  0x3f   :  { %260 = vmatprep.subr.bf16.mxu0 %v259_v9 }
  0x40   :  { %p352_p0 = pnand %p351_p13, %p345_p10 }
  0x42   :  { %262 = vmatpush3.bf16.msra.mxu0 %v259_v9 }
  0x43   :  { %264 = vmatprep.subr.bf16.mxu0 %v263_v12 }
  0x46   :  { %266 = vmatpush3.bf16.msra.mxu0 %v263_v12 }
  0x49   :  { %249 = vmatmul.mubr.msk.f32.vlgmr.msra.gmra.mrb[0].mxu0 %vm76_vm0, %v60_v13 }
 0x11c   :  { %v250_v15 = vpop.f32.mrb[0].mxu0 }
 0x11d   :  { %v155_v16 = vadd.f32 %v250_v15, %v219_v14  ;;  %v149_v17 = vpop.f32.mrb[1].mxu0 }
 0x11e   :  { %v150_v18 = vadd.f32 %v219_v14, %v149_v17 }
 0x11f   :  { %v159_v19 = vmul.f32 0.5, %v155_v16  ;;  %v183_v24 = vmul.f32 %v155_v16, %v155_v16  ;;  %v181_v35 = vadd.f32 1.0, %v155_v16 }
 0x120   :  { %v158_v20 = vmul.f32 0.5, %v150_v18  ;;  %v182_v21 = vmul.f32 %v150_v18, %v150_v18  ;;  %v180_v28 = vadd.f32 1.0, %v150_v18 }
 0x121   :  { %v162_v23 = vmul.f32 1.442695, %v159_v19 }
 0x122   :  { %v160_v22 = vmul.f32 1.442695, %v158_v20  ;;  %186 = vrot.lane.b32.xlu1 %v182_v21, %s377_s26 }
 0x124   :  { %274 = vpow2.f32 %v160_v22 }
 0x125   :  { %276 = vpow2.f32 %v162_v23 }
 0x126   :  { %188 = vrot.lane.b32.xlu1 %v183_v24, %s377_s26 }
 0x12e   :  { %v275_v25 = vpop.eup %274 }
 0x12f   :  { %170 = vrot.lane.b32.xlu0 %v275_v25, %s377_s26  ;;  %v277_v26 = vpop.eup %276  ;;  %v164_v34 = vmul.f32 %v275_v25, %v275_v25 }
 0x130   :  { %v165_v42 = vmul.f32 %v277_v26, %v277_v26 }
 0x133   :  { %172 = vrot.lane.b32.xlu0 %v277_v26, %s377_s26 }
 0x194   :  { %v187_v27 = vpop.permute.xlu1 %186 }
 0x195   :  { %v192_v30 = vsub.f32 %v180_v28, %v187_v27 }
 0x197   :  { %v194_v38 = vsub.f32 %v192_v30, %v164_v34 }
 0x198   :  { %v189_v32 = vpop.permute.xlu1 %188 }
 0x199   :  { %v193_v39 = vsub.f32 %v181_v35, %v189_v32 }
 0x19b   :  { %v195_v44 = vsub.f32 %v193_v39, %v165_v42 }
 0x1a1   :  { %v171_v31 = vpop.permute.xlu0 %170 }
 0x1a2   :  { %v176_v33 = vmul.f32 %v171_v31, %v166_v29 }
 0x1a4   :  { %v178_v37 = vadd.f32 %v176_v33, %v150_v18 }
 0x1a5   :  { %v173_v40 = vpop.permute.xlu0 %172 }
 0x1a6   :  { %196 = vst.msk [vmem:[#allocation8] sm:$0xff] %vm76_vm0, %v178_v37  ;;  %v177_v41 = vmul.f32 %v173_v40, %v167_v36 }
 0x1a7   :  { %199 = vst.msk [vmem:[#allocation8] sm:$0xff] %vm198_vm1, %v194_v38 }
 0x1a8   :  { %v179_v43 = vadd.f32 %v177_v41, %v155_v16 }
 0x1aa   :  { %197 = vst.msk [vmem:[#allocation8 + $0x8] sm:$0xff] %vm76_vm0, %v179_v43 }
 0x1ab   :  { %200 = vst.msk [vmem:[#allocation8 + $0x8] sm:$0xff] %vm198_vm1, %v195_v44 }
 0x1ac   :  { %355 = shalt.err (!%p352_p0)
}
 0x1ad   :  { %s356_s7 = scalar_lea.hbm %s482_s4, 256 }
 0x1ae   :  { %p357_p1 = scmp.ne.s32.totalorder %s482_s4, %s356_s7  ;;  %p360_p2 = scmp.lt.u32.totalorder %s356_s7, %s482_s4 }
 0x1b0   :  { %p362_p3 = pnand %p360_p2, %p357_p1 }
 0x1b2   :  { %365 = shalt.err (!%p362_p3)
}
 0x1b3   :  { %212 = dma.vmem_to_hbm [thread:$0]  %s207_s29, 256, %s482_s4, [#allocation4], %s374_s27, %s374_s27, %s375_s28  }
 0x1b4   :  { %370 = dma.done.wait [#allocation4], 256  }
 0x1b5   :  { %371 = vsyncadd [#allocation4], 4294967040 }
 0x1b6   :  { %216 = vsyncpa [#allocation3], 1 }
 0x1b7   :  { %217 = vsyncpa [#allocation6], 1 }
 0x1b8   :  { %218 = vsyncpa [#allocation4], 1 }

</bundles_post_ra>
